<compile_context>
chip_gen: v5e
topology: v5e:2x2
jax: 0.10.0
libtpu: 0.0.40
codegen_flags: <defaults>
</compile_context>

<pallas_src>
import math
import numpy as np

import jax
import jax.numpy as jnp
from jax.experimental import pallas as pl
from jax.experimental.pallas import tpu as pltpu

POOL_SIZES = (1, 2, 3, 6)
BN_EPS = 1e-5
P_PAD = 128  # fused pooled dim: 1+4+9+36 = 50, zero-padded to one full lane vreg


# ---------------------------------------------------------------------------
# Exact PyTorch-semantics operator matrices (plain numpy glue code)
# ---------------------------------------------------------------------------
def adaptive_avg_pool_matrix(out_size, in_size):
    """P[i, j] such that (P @ v) == PyTorch AdaptiveAvgPool1d semantics."""
    P = np.zeros((out_size, in_size), dtype=np.float32)
    for i in range(out_size):
        start = (i * in_size) // out_size
        end = -(-((i + 1) * in_size) // out_size)  # ceil
        P[i, start:end] = 1.0 / (end - start)
    return P


def bilinear_upsample_matrix(out_size, in_size):
    """U[i, j] such that (U @ v) == F.interpolate(mode='bilinear',
    align_corners=False) along one axis (PyTorch source-index convention)."""
    U = np.zeros((out_size, in_size), dtype=np.float32)
    scale = in_size / out_size
    for i in range(out_size):
        src = scale * (i + 0.5) - 0.5
        src = max(src, 0.0)
        i0 = min(int(math.floor(src)), in_size - 1)
        i1 = min(i0 + 1, in_size - 1)
        l1 = src - i0
        U[i, i0] += 1.0 - l1
        U[i, i1] += l1
    return U


def build_operator_matrices(H, W, pool_sizes):
    """Per-stage matrices:  pooled_flat = x_flat @ pool_mat   (H*W, ps*ps)
                            up_flat     = y_flat @ up_mat     (ps*ps, H*W)"""
    pool_mats, up_mats = [], []
    for ps in pool_sizes:
        Ph = adaptive_avg_pool_matrix(ps, H)        # (ps, H)
        Pw = adaptive_avg_pool_matrix(ps, W)        # (ps, W)
        pool_mats.append(np.kron(Ph, Pw).T.astype(np.float32))   # (H*W, ps*ps)
        Uh = bilinear_upsample_matrix(H, ps)        # (H, ps)
        Uw = bilinear_upsample_matrix(W, ps)        # (W, ps)
        up_mats.append(np.kron(Uh, Uw).T.astype(np.float32))     # (ps*ps, H*W)
    return pool_mats, up_mats


def fuse_operator_matrices(pool_mats, up_mats, p_pad=P_PAD):
    """Concatenate the per-stage matrices into two lane-dense, zero-padded slabs."""
    HW = pool_mats[0].shape[0]
    P = sum(m.shape[1] for m in pool_mats)
    assert P <= p_pad
    pool_all = np.zeros((HW, p_pad), np.float32)
    up_all = np.zeros((p_pad, HW), np.float32)
    pool_all[:, :P] = np.concatenate(pool_mats, axis=1)
    up_all[:P, :] = np.concatenate(up_mats, axis=0)
    return pool_all, up_all


# ---------------------------------------------------------------------------
# Pallas kernel: one batch element per grid step.
# ---------------------------------------------------------------------------
def _pyramid_kernel(x_ref,
                    pool_ref, up_ref,          # fused pooling / upsample matrices
                    wc_ref, sh_ref,            # per-stage 1x1 conv (BN scale folded) + shift
                    wbx_ref, wbs_ref, bb_ref,  # bottleneck conv slices + bias
                    o_ref):
    x = x_ref[...]                                                      # (C_in, HW) bf16

    # Bottleneck contribution of the identity branch of the concat.
    acc = jnp.dot(wbx_ref[...], x, preferred_element_type=jnp.float32)  # (C_out, HW) f32

    # All four AdaptiveAvgPool2d stages in one lane-dense matmul.
    pooled = jnp.dot(x, pool_ref[...], preferred_element_type=jnp.float32)  # (C_in, P_PAD)
    pooled = pooled.astype(jnp.bfloat16)

    # Per-stage: 1x1 conv (BN scale pre-folded) + BN shift + ReLU, then apply the
    # bottleneck channel-mix wbs[s] while the tensor is still tiny (C_out, ps*ps).
    z_parts = []
    off = 0
    for s, ps in enumerate(POOL_SIZES):
        n = ps * ps
        p_s = pooled[:, off:off + n]                                    # (C_in, n)
        y = jnp.dot(wc_ref[s], p_s, preferred_element_type=jnp.float32) # (C_out, n)
        y = jnp.maximum(y + sh_ref[s], 0.0)                             # folded BN shift + ReLU
        z = jnp.dot(wbs_ref[s], y.astype(jnp.bfloat16),
                    preferred_element_type=jnp.float32)                 # (C_out, n)
        z_parts.append(z)
        off += n

    c_out = z_parts[0].shape[0]
    z_parts.append(jnp.zeros((c_out, P_PAD - off), jnp.float32))        # pad to 128 lanes
    z_all = jnp.concatenate(z_parts, axis=-1).astype(jnp.bfloat16)      # (C_out, P_PAD)

    # All four bilinear upsamples + their bottleneck contributions in ONE matmul.
    acc = acc + jnp.dot(z_all, up_ref[...], preferred_element_type=jnp.float32)

    o_ref[...] = (acc + bb_ref[...]).astype(o_ref.dtype)                # bias over HW


def _const_spec(arr):
    """Full-array BlockSpec for a grid-invariant operand; single-buffered."""
    nd = arr.ndim
    idx = lambda n, _nd=nd: (0,) * _nd
    try:
        return pl.BlockSpec(arr.shape, idx, pipeline_mode=pl.Buffered(1))
    except TypeError:  # older jax without pipeline_mode on BlockSpec
        return pl.BlockSpec(arr.shape, idx)


def pyramid_pooling_forward(x, params, pool_all, up_all):
    """x: (N, C_in, H, W) float32. Returns (N, C_out, H, W) float32."""
    N, C_in, H, W = x.shape
    HW = H * W
    wc_all, sc_all, sh_all, wbx, wbs_all, bb = params
    C_out = wc_all.shape[1]

    # Offline prep: fold BN scale into the stage conv weights, cast operands to bf16.
    wc_folded = (sc_all * wc_all).astype(jnp.bfloat16)      # (S, C_out, C_in)
    sh_f32 = sh_all.astype(jnp.float32)                     # (S, C_out, 1)
    wbx_bf = wbx.astype(jnp.bfloat16)                       # (C_out, C_in)
    wbs_bf = wbs_all.astype(jnp.bfloat16)                   # (S, C_out, C_out)
    bb_f32 = bb.astype(jnp.float32)                         # (C_out, 1)
    pool_bf = jnp.asarray(pool_all, jnp.bfloat16)           # (HW, P_PAD)
    up_bf = jnp.asarray(up_all, jnp.bfloat16)               # (P_PAD, HW)

    x2 = x.reshape(N, C_in, HW).astype(jnp.bfloat16)

    const_args = (pool_bf, up_bf, wc_folded, sh_f32, wbx_bf, wbs_bf, bb_f32)

    in_specs = [pl.BlockSpec((None, C_in, HW), lambda n: (n, 0, 0))]
    in_specs += [_const_spec(a) for a in const_args]

    out2 = pl.pallas_call(
        _pyramid_kernel,
        out_shape=jax.ShapeDtypeStruct((N, C_out, HW), jnp.float32),
        grid_spec=pltpu.PrefetchScalarGridSpec(
            num_scalar_prefetch=0,
            grid=(N,),
            in_specs=in_specs,
            out_specs=pl.BlockSpec((None, C_out, HW), lambda n: (n, 0, 0)),
        ),
        compiler_params=pltpu.CompilerParams(
            dimension_semantics=("parallel",),
            vmem_limit_bytes=64 * 1024 * 1024,
        ),
    )(x2, *const_args)

    return out2.reshape(N, C_out, H, W)


# ---------------------------------------------------------------------------
# Pure-JAX f32 reference with the ORIGINAL (unfused, unassociated) math,
# to validate the fusion / reassociation / BN folding end-to-end.
# ---------------------------------------------------------------------------
def reference_forward(x, params, pool_mats, up_mats):
    N, C_in, H, W = x.shape
    HW = H * W
    wc_all, sc_all, sh_all, wbx, wbs_all, bb = params
    x2 = x.reshape(N, C_in, HW)
    acc = jnp.einsum('oc,nck->nok', wbx, x2)
    for s in range(len(POOL_SIZES)):
        pooled = jnp.einsum('nck,kp->ncp', x2, pool_mats[s])
        y = jnp.einsum('oc,ncp->nop', wc_all[s], pooled)
        y = jnp.maximum(y * sc_all[s][None] + sh_all[s][None], 0.0)
        u = jnp.einsum('nop,pk->nok', y, up_mats[s])
        acc = acc + jnp.einsum('oc,nck->nok', wbs_all[s], u)
    out = acc + bb[None]
    return out.reshape(N, -1, H, W)


# ---------------------------------------------------------------------------
# Deterministic parameter construction (synthetic, no checkpoint loading)
# ---------------------------------------------------------------------------
def init_params(key, C_in, C_out, n_stages):
    ks = jax.random.split(key, 8)
    # per-stage 1x1 conv weights (Conv2d(C_in, C_out, 1, bias=False)) -> (S, C_out, C_in)
    wc_all = 0.2 * jax.random.normal(ks[0], (n_stages, C_out, C_in), jnp.float32)
    # BatchNorm2d params + running stats (eval mode), folded into scale/shift
    gamma = 1.0 + 0.1 * jax.random.normal(ks[1], (n_stages, C_out), jnp.float32)
    beta = 0.1 * jax.random.normal(ks[2], (n_stages, C_out), jnp.float32)
    r_mean = 0.1 * jax.random.normal(ks[3], (n_stages, C_out), jnp.float32)
    r_var = 0.5 + jax.random.uniform(ks[4], (n_stages, C_out), jnp.float32)
    scale = gamma / jnp.sqrt(r_var + BN_EPS)
    shift = beta - r_mean * scale
    sc_all = scale[..., None]                              # (S, C_out, 1)
    sh_all = shift[..., None]                              # (S, C_out, 1)
    # bottleneck Conv2d(C_in + S*C_out, C_out, 1, bias=True)
    C_total = C_in + n_stages * C_out
    wb = 0.2 * jax.random.normal(ks[5], (C_out, C_total), jnp.float32)
    bb = 0.1 * jax.random.normal(ks[6], (C_out,), jnp.float32)
    wbx = wb[:, :C_in]                                     # identity-branch slice
    wbs_all = wb[:, C_in:].reshape(C_out, n_stages, C_out).transpose(1, 0, 2)  # (S, C_out, C_out)
    bb = bb.reshape(C_out, 1)
    return wc_all, sc_all, sh_all, wbx, wbs_all, bb


if __name__ == "__main__":
    N, C_in, C_out, H, W = 2, 4, 4, 16, 16

    key = jax.random.PRNGKey(0)
    k_x, k_p = jax.random.split(key)
    x = jax.random.normal(k_x, (N, C_in, H, W), jnp.float32)

    params = init_params(k_p, C_in, C_out, len(POOL_SIZES))
    pool_np, up_np = build_operator_matrices(H, W, POOL_SIZES)
    pool_all, up_all = fuse_operator_matrices(pool_np, up_np)

    out = pyramid_pooling_forward(x, params, pool_all, up_all)
    out = jax.block_until_ready(out)

    ref = reference_forward(x, params,
                            [jnp.asarray(p) for p in pool_np],
                            [jnp.asarray(u) for u in up_np])
    assert out.shape == (N, C_out, H, W)
    assert bool(jnp.all(jnp.isfinite(out)))
    # bf16 inputs / weights with f32 accumulation vs. the pure-f32 reference
    np.testing.assert_allclose(np.asarray(out), np.asarray(ref), rtol=5e-2, atol=5e-2)

    print("KERNEL_OK")
</pallas_src>

<mosaic_0001>
module attributes {stable_mosaic.version = 11 : i64} {
  func.func @_pyramid_kernel(%arg0: i32, %arg1: memref<1x4x256xbf16, #tpu.memory_space<vmem>>, %arg2: memref<256x128xbf16, #tpu.memory_space<vmem>>, %arg3: memref<128x256xbf16, #tpu.memory_space<vmem>>, %arg4: memref<4x4x4xbf16, #tpu.memory_space<vmem>>, %arg5: memref<4x4x1xf32, #tpu.memory_space<vmem>>, %arg6: memref<4x4xbf16, #tpu.memory_space<vmem>>, %arg7: memref<4x4x4xbf16, #tpu.memory_space<vmem>>, %arg8: memref<4x1xf32, #tpu.memory_space<vmem>>, %arg9: memref<1x4x256xf32, #tpu.memory_space<vmem>>) attributes {dimension_semantics = [#tpu.dimension_semantics<parallel>], iteration_bounds = array<i64: 2>, scalar_prefetch = 0 : i64, scratch_operands = 0 : i64, tpu.core_type = #tpu.core_type<tc>, window_params = [{transform_indices = @transform_0, window_bounds = array<i64: 1, 4, 256>}, {pipeline_mode = #tpu.pipeline_mode<synchronous>, transform_indices = @transform_1, window_bounds = array<i64: 256, 128>}, {pipeline_mode = #tpu.pipeline_mode<synchronous>, transform_indices = @transform_2, window_bounds = array<i64: 128, 256>}, {pipeline_mode = #tpu.pipeline_mode<synchronous>, transform_indices = @transform_3, window_bounds = array<i64: 4, 4, 4>}, {pipeline_mode = #tpu.pipeline_mode<synchronous>, transform_indices = @transform_4, window_bounds = array<i64: 4, 4, 1>}, {pipeline_mode = #tpu.pipeline_mode<synchronous>, transform_indices = @transform_5, window_bounds = array<i64: 4, 4>}, {pipeline_mode = #tpu.pipeline_mode<synchronous>, transform_indices = @transform_6, window_bounds = array<i64: 4, 4, 4>}, {pipeline_mode = #tpu.pipeline_mode<synchronous>, transform_indices = @transform_7, window_bounds = array<i64: 4, 1>}, {transform_indices = @transform_8, window_bounds = array<i64: 1, 4, 256>}]} {
    %c0 = arith.constant 0 : index
    %c0_0 = arith.constant 0 : index
    %c0_1 = arith.constant 0 : index
    %0 = vector.load %arg1[%c0, %c0_0, %c0_1] : memref<1x4x256xbf16, #tpu.memory_space<vmem>>, vector<1x4x256xbf16>
    %1 = vector.shape_cast %0 : vector<1x4x256xbf16> to vector<4x256xbf16>
    %c0_2 = arith.constant 0 : index
    %c0_3 = arith.constant 0 : index
    %2 = vector.load %arg6[%c0_2, %c0_3] : memref<4x4xbf16, #tpu.memory_space<vmem>>, vector<4x4xbf16>
    %cst = arith.constant dense<0.000000e+00> : vector<4x256xf32>
    %3 = tpu.matmul %2, %1, %cst {dimension_numbers = #tpu.dot_dimension_numbers<[1], [0], [0], [1], [0, 0, 1, 1], [], []>} : vector<4x4xbf16>, vector<4x256xbf16>, vector<4x256xf32> -> vector<4x256xf32>
    %c0_4 = arith.constant 0 : index
    %c0_5 = arith.constant 0 : index
    %4 = vector.load %arg2[%c0_4, %c0_5] : memref<256x128xbf16, #tpu.memory_space<vmem>>, vector<256x128xbf16>
    %cst_6 = arith.constant dense<0.000000e+00> : vector<4x128xf32>
    %5 = tpu.matmul %1, %4, %cst_6 {dimension_numbers = #tpu.dot_dimension_numbers<[1], [0], [0], [1], [0, 0, 1, 1], [], []>} : vector<4x256xbf16>, vector<256x128xbf16>, vector<4x128xf32> -> vector<4x128xf32>
    %6 = arith.truncf %5 : vector<4x128xf32> to vector<4x128xbf16>
    %7 = vector.extract_strided_slice %6 {offsets = [0, 0], sizes = [4, 1], strides = [1, 1]} : vector<4x128xbf16> to vector<4x1xbf16>
    %c0_7 = arith.constant 0 : index
    %c0_8 = arith.constant 0 : index
    %c0_9 = arith.constant 0 : index
    %8 = vector.load %arg4[%c0_7, %c0_8, %c0_9] : memref<4x4x4xbf16, #tpu.memory_space<vmem>>, vector<1x4x4xbf16>
    %9 = vector.shape_cast %8 : vector<1x4x4xbf16> to vector<4x4xbf16>
    %cst_10 = arith.constant dense<0.000000e+00> : vector<4x1xf32>
    %10 = tpu.matmul %9, %7, %cst_10 {dimension_numbers = #tpu.dot_dimension_numbers<[1], [0], [0], [1], [0, 0, 1, 1], [], []>} : vector<4x4xbf16>, vector<4x1xbf16>, vector<4x1xf32> -> vector<4x1xf32>
    %c0_11 = arith.constant 0 : index
    %c0_12 = arith.constant 0 : index
    %c0_13 = arith.constant 0 : index
    %11 = vector.load %arg5[%c0_11, %c0_12, %c0_13] : memref<4x4x1xf32, #tpu.memory_space<vmem>>, vector<1x4x1xf32>
    %12 = vector.shape_cast %11 : vector<1x4x1xf32> to vector<4x1xf32>
    %13 = arith.addf %10, %12 : vector<4x1xf32>
    %cst_14 = arith.constant 0.000000e+00 : f32
    %14 = vector.broadcast %cst_14 : f32 to vector<4x1xf32>
    %15 = arith.maximumf %13, %14 : vector<4x1xf32>
    %c0_15 = arith.constant 0 : index
    %c0_16 = arith.constant 0 : index
    %c0_17 = arith.constant 0 : index
    %16 = vector.load %arg7[%c0_15, %c0_16, %c0_17] : memref<4x4x4xbf16, #tpu.memory_space<vmem>>, vector<1x4x4xbf16>
    %17 = vector.shape_cast %16 : vector<1x4x4xbf16> to vector<4x4xbf16>
    %18 = arith.truncf %15 : vector<4x1xf32> to vector<4x1xbf16>
    %cst_18 = arith.constant dense<0.000000e+00> : vector<4x1xf32>
    %19 = tpu.matmul %17, %18, %cst_18 {dimension_numbers = #tpu.dot_dimension_numbers<[1], [0], [0], [1], [0, 0, 1, 1], [], []>} : vector<4x4xbf16>, vector<4x1xbf16>, vector<4x1xf32> -> vector<4x1xf32>
    %20 = vector.extract_strided_slice %6 {offsets = [0, 1], sizes = [4, 4], strides = [1, 1]} : vector<4x128xbf16> to vector<4x4xbf16>
    %c1 = arith.constant 1 : index
    %c0_19 = arith.constant 0 : index
    %c0_20 = arith.constant 0 : index
    %21 = vector.load %arg4[%c1, %c0_19, %c0_20] : memref<4x4x4xbf16, #tpu.memory_space<vmem>>, vector<1x4x4xbf16>
    %22 = vector.shape_cast %21 : vector<1x4x4xbf16> to vector<4x4xbf16>
    %cst_21 = arith.constant dense<0.000000e+00> : vector<4x4xf32>
    %23 = tpu.matmul %22, %20, %cst_21 {dimension_numbers = #tpu.dot_dimension_numbers<[1], [0], [0], [1], [0, 0, 1, 1], [], []>} : vector<4x4xbf16>, vector<4x4xbf16>, vector<4x4xf32> -> vector<4x4xf32>
    %c1_22 = arith.constant 1 : index
    %c0_23 = arith.constant 0 : index
    %c0_24 = arith.constant 0 : index
    %24 = vector.load %arg5[%c1_22, %c0_23, %c0_24] : memref<4x4x1xf32, #tpu.memory_space<vmem>>, vector<1x4x1xf32>
    %25 = vector.shape_cast %24 : vector<1x4x1xf32> to vector<4x1xf32>
    %26 = vector.broadcast %25 : vector<4x1xf32> to vector<4x4xf32>
    %27 = arith.addf %23, %26 : vector<4x4xf32>
    %cst_25 = arith.constant 0.000000e+00 : f32
    %28 = vector.broadcast %cst_25 : f32 to vector<4x4xf32>
    %29 = arith.maximumf %27, %28 : vector<4x4xf32>
    %c1_26 = arith.constant 1 : index
    %c0_27 = arith.constant 0 : index
    %c0_28 = arith.constant 0 : index
    %30 = vector.load %arg7[%c1_26, %c0_27, %c0_28] : memref<4x4x4xbf16, #tpu.memory_space<vmem>>, vector<1x4x4xbf16>
    %31 = vector.shape_cast %30 : vector<1x4x4xbf16> to vector<4x4xbf16>
    %32 = arith.truncf %29 : vector<4x4xf32> to vector<4x4xbf16>
    %cst_29 = arith.constant dense<0.000000e+00> : vector<4x4xf32>
    %33 = tpu.matmul %31, %32, %cst_29 {dimension_numbers = #tpu.dot_dimension_numbers<[1], [0], [0], [1], [0, 0, 1, 1], [], []>} : vector<4x4xbf16>, vector<4x4xbf16>, vector<4x4xf32> -> vector<4x4xf32>
    %34 = vector.extract_strided_slice %6 {offsets = [0, 5], sizes = [4, 9], strides = [1, 1]} : vector<4x128xbf16> to vector<4x9xbf16>
    %c2 = arith.constant 2 : index
    %c0_30 = arith.constant 0 : index
    %c0_31 = arith.constant 0 : index
    %35 = vector.load %arg4[%c2, %c0_30, %c0_31] : memref<4x4x4xbf16, #tpu.memory_space<vmem>>, vector<1x4x4xbf16>
    %36 = vector.shape_cast %35 : vector<1x4x4xbf16> to vector<4x4xbf16>
    %cst_32 = arith.constant dense<0.000000e+00> : vector<4x9xf32>
    %37 = tpu.matmul %36, %34, %cst_32 {dimension_numbers = #tpu.dot_dimension_numbers<[1], [0], [0], [1], [0, 0, 1, 1], [], []>} : vector<4x4xbf16>, vector<4x9xbf16>, vector<4x9xf32> -> vector<4x9xf32>
    %c2_33 = arith.constant 2 : index
    %c0_34 = arith.constant 0 : index
    %c0_35 = arith.constant 0 : index
    %38 = vector.load %arg5[%c2_33, %c0_34, %c0_35] : memref<4x4x1xf32, #tpu.memory_space<vmem>>, vector<1x4x1xf32>
    %39 = vector.shape_cast %38 : vector<1x4x1xf32> to vector<4x1xf32>
    %40 = vector.broadcast %39 : vector<4x1xf32> to vector<4x9xf32>
    %41 = arith.addf %37, %40 : vector<4x9xf32>
    %cst_36 = arith.constant 0.000000e+00 : f32
    %42 = vector.broadcast %cst_36 : f32 to vector<4x9xf32>
    %43 = arith.maximumf %41, %42 : vector<4x9xf32>
    %c2_37 = arith.constant 2 : index
    %c0_38 = arith.constant 0 : index
    %c0_39 = arith.constant 0 : index
    %44 = vector.load %arg7[%c2_37, %c0_38, %c0_39] : memref<4x4x4xbf16, #tpu.memory_space<vmem>>, vector<1x4x4xbf16>
    %45 = vector.shape_cast %44 : vector<1x4x4xbf16> to vector<4x4xbf16>
    %46 = arith.truncf %43 : vector<4x9xf32> to vector<4x9xbf16>
    %cst_40 = arith.constant dense<0.000000e+00> : vector<4x9xf32>
    %47 = tpu.matmul %45, %46, %cst_40 {dimension_numbers = #tpu.dot_dimension_numbers<[1], [0], [0], [1], [0, 0, 1, 1], [], []>} : vector<4x4xbf16>, vector<4x9xbf16>, vector<4x9xf32> -> vector<4x9xf32>
    %48 = vector.extract_strided_slice %6 {offsets = [0, 14], sizes = [4, 36], strides = [1, 1]} : vector<4x128xbf16> to vector<4x36xbf16>
    %c3 = arith.constant 3 : index
    %c0_41 = arith.constant 0 : index
    %c0_42 = arith.constant 0 : index
    %49 = vector.load %arg4[%c3, %c0_41, %c0_42] : memref<4x4x4xbf16, #tpu.memory_space<vmem>>, vector<1x4x4xbf16>
    %50 = vector.shape_cast %49 : vector<1x4x4xbf16> to vector<4x4xbf16>
    %cst_43 = arith.constant dense<0.000000e+00> : vector<4x36xf32>
    %51 = tpu.matmul %50, %48, %cst_43 {dimension_numbers = #tpu.dot_dimension_numbers<[1], [0], [0], [1], [0, 0, 1, 1], [], []>} : vector<4x4xbf16>, vector<4x36xbf16>, vector<4x36xf32> -> vector<4x36xf32>
    %c3_44 = arith.constant 3 : index
    %c0_45 = arith.constant 0 : index
    %c0_46 = arith.constant 0 : index
    %52 = vector.load %arg5[%c3_44, %c0_45, %c0_46] : memref<4x4x1xf32, #tpu.memory_space<vmem>>, vector<1x4x1xf32>
    %53 = vector.shape_cast %52 : vector<1x4x1xf32> to vector<4x1xf32>
    %54 = vector.broadcast %53 : vector<4x1xf32> to vector<4x36xf32>
    %55 = arith.addf %51, %54 : vector<4x36xf32>
    %cst_47 = arith.constant 0.000000e+00 : f32
    %56 = vector.broadcast %cst_47 : f32 to vector<4x36xf32>
    %57 = arith.maximumf %55, %56 : vector<4x36xf32>
    %c3_48 = arith.constant 3 : index
    %c0_49 = arith.constant 0 : index
    %c0_50 = arith.constant 0 : index
    %58 = vector.load %arg7[%c3_48, %c0_49, %c0_50] : memref<4x4x4xbf16, #tpu.memory_space<vmem>>, vector<1x4x4xbf16>
    %59 = vector.shape_cast %58 : vector<1x4x4xbf16> to vector<4x4xbf16>
    %60 = arith.truncf %57 : vector<4x36xf32> to vector<4x36xbf16>
    %cst_51 = arith.constant dense<0.000000e+00> : vector<4x36xf32>
    %61 = tpu.matmul %59, %60, %cst_51 {dimension_numbers = #tpu.dot_dimension_numbers<[1], [0], [0], [1], [0, 0, 1, 1], [], []>} : vector<4x4xbf16>, vector<4x36xbf16>, vector<4x36xf32> -> vector<4x36xf32>
    %cst_52 = arith.constant 0.000000e+00 : f32
    %62 = vector.broadcast %cst_52 : f32 to vector<4x78xf32>
    %63 = tpu.concatenate %19, %33, %47, %61, %62 in 1 : vector<4x1xf32>, vector<4x4xf32>, vector<4x9xf32>, vector<4x36xf32>, vector<4x78xf32> -> vector<4x128xf32>
    %64 = arith.truncf %63 : vector<4x128xf32> to vector<4x128xbf16>
    %c0_53 = arith.constant 0 : index
    %c0_54 = arith.constant 0 : index
    %65 = vector.load %arg3[%c0_53, %c0_54] : memref<128x256xbf16, #tpu.memory_space<vmem>>, vector<128x256xbf16>
    %cst_55 = arith.constant dense<0.000000e+00> : vector<4x256xf32>
    %66 = tpu.matmul %64, %65, %cst_55 {dimension_numbers = #tpu.dot_dimension_numbers<[1], [0], [0], [1], [0, 0, 1, 1], [], []>} : vector<4x128xbf16>, vector<128x256xbf16>, vector<4x256xf32> -> vector<4x256xf32>
    %67 = arith.addf %3, %66 : vector<4x256xf32>
    %c0_56 = arith.constant 0 : index
    %c0_57 = arith.constant 0 : index
    %68 = vector.load %arg8[%c0_56, %c0_57] : memref<4x1xf32, #tpu.memory_space<vmem>>, vector<4x1xf32>
    %69 = vector.broadcast %68 : vector<4x1xf32> to vector<4x256xf32>
    %70 = arith.addf %67, %69 : vector<4x256xf32>
    %c0_58 = arith.constant 0 : index
    %c0_59 = arith.constant 0 : index
    %c0_60 = arith.constant 0 : index
    %71 = vector.load %arg9[%c0_58, %c0_59, %c0_60] : memref<1x4x256xf32, #tpu.memory_space<vmem>>, vector<1x4x256xf32>
    %72 = vector.shape_cast %71 : vector<1x4x256xf32> to vector<4x256xf32>
    %73 = vector.shape_cast %70 : vector<4x256xf32> to vector<1x4x256xf32>
    tpu.vector_store %arg9[%c0_58, %c0_59, %c0_60], %73 {strides = array<i32>} : memref<1x4x256xf32, #tpu.memory_space<vmem>>, vector<1x4x256xf32>,
    return
  }
  func.func @transform_0(%arg0: i32) -> (i32, i32, i32) {
    %c0_i32 = arith.constant 0 : i32
    %c0_i32_0 = arith.constant 0 : i32
    %c0_i32_1 = arith.constant 0 : i32
    return %arg0, %c0_i32, %c0_i32_0 : i32, i32, i32
  }
  func.func @transform_1(%arg0: i32) -> (i32, i32) {
    %c0_i32 = arith.constant 0 : i32
    %c0_i32_0 = arith.constant 0 : i32
    %c0_i32_1 = arith.constant 0 : i32
    return %c0_i32, %c0_i32_0 : i32, i32
  }
  func.func @transform_2(%arg0: i32) -> (i32, i32) {
    %c0_i32 = arith.constant 0 : i32
    %c0_i32_0 = arith.constant 0 : i32
    %c0_i32_1 = arith.constant 0 : i32
    return %c0_i32, %c0_i32_0 : i32, i32
  }
  func.func @transform_3(%arg0: i32) -> (i32, i32, i32) {
    %c0_i32 = arith.constant 0 : i32
    %c0_i32_0 = arith.constant 0 : i32
    %c0_i32_1 = arith.constant 0 : i32
    %c0_i32_2 = arith.constant 0 : i32
    return %c0_i32, %c0_i32_0, %c0_i32_1 : i32, i32, i32
  }
  func.func @transform_4(%arg0: i32) -> (i32, i32, i32) {
    %c0_i32 = arith.constant 0 : i32
    %c0_i32_0 = arith.constant 0 : i32
    %c0_i32_1 = arith.constant 0 : i32
    %c0_i32_2 = arith.constant 0 : i32
    return %c0_i32, %c0_i32_0, %c0_i32_1 : i32, i32, i32
  }
  func.func @transform_5(%arg0: i32) -> (i32, i32) {
    %c0_i32 = arith.constant 0 : i32
    %c0_i32_0 = arith.constant 0 : i32
    %c0_i32_1 = arith.constant 0 : i32
    return %c0_i32, %c0_i32_0 : i32, i32
  }
  func.func @transform_6(%arg0: i32) -> (i32, i32, i32) {
    %c0_i32 = arith.constant 0 : i32
    %c0_i32_0 = arith.constant 0 : i32
    %c0_i32_1 = arith.constant 0 : i32
    %c0_i32_2 = arith.constant 0 : i32
    return %c0_i32, %c0_i32_0, %c0_i32_1 : i32, i32, i32
  }
  func.func @transform_7(%arg0: i32) -> (i32, i32) {
    %c0_i32 = arith.constant 0 : i32
    %c0_i32_0 = arith.constant 0 : i32
    %c0_i32_1 = arith.constant 0 : i32
    return %c0_i32, %c0_i32_0 : i32, i32
  }
  func.func @transform_8(%arg0: i32) -> (i32, i32, i32) {
    %c0_i32 = arith.constant 0 : i32
    %c0_i32_0 = arith.constant 0 : i32
    %c0_i32_1 = arith.constant 0 : i32
    return %arg0, %c0_i32, %c0_i32_0 : i32, i32, i32
  }
}

</mosaic_0001>

<bundles_post_ra>
// kernel: tpu_custom_call.1
= control target key start
LH: loop header
LB: loop body
LE: loop exit
PB: predicated region body
PF: predicated region fallthrough
CT: control target
= control target key end

     0   :  { %s1713_s0 = inlined_call_operand.vmem [shape: bf16[2,4,256], index: 0, kind: input, shape index: {}]   ;;  %s1714_s1 = inlined_call_operand.hbm [shape: bf16[256,128], index: 1, kind: input, shape index: {}]   ;;  %s1715_s2 = inlined_call_operand.hbm [shape: bf16[128,256], index: 2, kind: input, shape index: {}]   ;;  %s1716_s3 = inlined_call_operand.vmem [shape: bf16[4,4,4], index: 3, kind: input, shape index: {}]   ;;  %s1717_s4 = inlined_call_operand.vmem [shape: f32[4,4,1], index: 4, kind: input, shape index: {}]   ;;  %s1718_s5 = inlined_call_operand.vmem [shape: bf16[4,4], index: 5, kind: input, shape index: {}]   ;;  %s1719_s6 = inlined_call_operand.hbm [shape: bf16[4,4,4], index: 6, kind: input, shape index: {}]   ;;  %s1720_s7 = inlined_call_operand.vmem [shape: f32[4,1], index: 7, kind: input, shape index: {}]   ;;  %s1721_s8 = inlined_call_operand.hbm [shape: f32[2,4,256], index: 8, kind: output, shape index: {}]  }
   0x1   :  { %1725 = sst [smem:[#allocation15_spill]] %s1714_s1 }
   0x2   :  { %1726 = sst [smem:[#allocation16_spill]] %s1715_s2 }
   0x3   :  { %13 = vsyncpa [#allocation3], 0 }
   0x4   :  { %14 = vsyncpa [#allocation6], 0 }
   0x5   :  { %15 = vsyncpa [#allocation4], 0 }
   0x6   :  { %17 = vsyncpa [#allocation4 + $0x1], 0  ;;  %s1537_s27 = smov 0   ;;  %s1539_s28 = smov 0  }
   0x7   :  { %s1541_s29 = smov 0   ;;  %s1543_s30 = smov 0  }
   0x8 LB: > { %1727 = sst [smem:[#allocation12_spill]] %s1470_s29  ;;  %s1558_s9 = sadd.s32 4294967295, %s1474_s30   ;;  %s1474_s30 = sphi %s1543_s30, %s1736_s30   ;;  %s1470_s29 = sphi %s1541_s29, %s1738_s29   ;;  %s1466_s28 = sphi %s1539_s28, %s1740_s28   ;;  %s1462_s27 = sphi %s1537_s27, %s1739_s27  }
   0x9   : > { %s1026_s10 = sadd.s32 4294967294, %s1474_s30   ;;  %s1562_s11 = sadd.s32 1, %s1474_s30  }
   0xa   : > { %1728 = sst [smem:[#allocation13_spill]] %s1562_s11  ;;  %s203_s12 = sadd.s32 1, %s1470_s29 }
   0xb   : > { %s200_s13 = ssub.s32 %s1474_s30, %s1562_s11  ;;  %p213_p0 = scmp.ne.s32.totalorder %s1470_s29, %s1466_s28 }
   0xc   : > { %p201_p1 = scmp.eq.s32.totalorder %s200_s13, 0  ;;  %p214_p2 = scmp.eq.s32.totalorder %s1558_s9, 1 }
   0xd   : > { %p219_p3 = scmp.ne.s32.totalorder %s1466_s28, %s1462_s27  ;;  %p220_p4 = scmp.eq.s32.totalorder %s1026_s10, 1 }
   0xe   : > { %s1573_s14 = scalar_select %p201_p1, %s1470_s29, %s203_s12  }
   0xf   : > { %p1575_p5 = por %p214_p2, %p213_p0  ;;  %p1579_p6 = por %p220_p4, %p219_p3 }
  0x10   : > { %1729 = sst [smem:[#allocation14_spill]] %s1573_s14  ;;  %p1027_p7 = scmp.ge.s32.totalorder %s1474_s30, 1 }
  0x11   : > { %p227_p8 = scmp.lt.s32.totalorder %s1474_s30, 3  ;;  %p1256_p9 = scmp.eq.s32.totalorder %s1558_s9, 0 }
  0x12   : > { %s1733_s2 = sld [smem:[#allocation16_spill]]  ;;  %s1476_s21 = smov [#allocation5]  }
  0x13   : > { %p1586_p10 = pnand %p1027_p7, %p227_p8  ;;  %s254_s22 = sshll.u32 %s1476_s21, 4  ;;  %s255_s22 = int_to_ptr.vmem [resolvable:$true] %s254_s22 }
  0x14   : > { %s1735_s1 = sld [smem:[#allocation15_spill]]  ;;  %s1477_s10 = smov 128  }
  0x15   : > { %p1242_p11 = pneg %p1586_p10  ;;  %s1478_s12 = smov 8  }
  0x16   : > { %s1479_s13 = smov [#allocation2]   ;;  %s1480_s19 = smov 64  }
  0x17   : > { %p1597_p12 = pnand %p1256_p9, %p1242_p11  ;;  %s240_s18 = sshll.u32 %s1479_s13, 4  ;;  %s241_s18 = int_to_ptr.vmem [resolvable:$true] %s240_s18 }
  0x18   : > { %s252_s20 = sshll.u32 %s1733_s2, 4  ;;  %s1481_s21 = smov 4   ;;  %s253_s20 = int_to_ptr.hbm [resolvable:$true] %s252_s20 }
  0x19   : > { %1248 = dma.hbm_to_vmem [thread:$0]  (!%p1597_p12), %s253_s20, 2048, %s255_s22, [#allocation6], %s1477_s10, %s1477_s10, %s1478_s12  }
  0x1a   : > { %s238_s26 = sshll.u32 %s1735_s1, 4  ;;  %s275_s24 = sshll.u32 %s1719_s6, 4  ;;  %s239_s26 = int_to_ptr.hbm [resolvable:$true] %s238_s26  ;;  %s276_s24 = int_to_ptr.hbm [resolvable:$true] %s275_s24 }
  0x1b   : > { %1245 = dma.hbm_to_vmem [thread:$0]  (!%p1597_p12), %s239_s26, 2048, %s241_s18, [#allocation3], %s1480_s19, %s1480_s19, %s1481_s21  }
  0x1c   : > { %s1482_s25 = smov [#allocation7]   ;;  %s1483_s29 = smov 32  }
  0x1d   : > { %s277_s1 = sshll.u32 %s1482_s25, 4  ;;  %s1484_s11 = smov 2   ;;  %s278_s1 = int_to_ptr.vmem [resolvable:$true] %s277_s1 }
  0x1e   : > { %1251 = dma.hbm_to_vmem [thread:$0]  (!%p1597_p12), %s276_s24, 128, %s278_s1, [#allocation6], %s1483_s29, %s1483_s29, %s1484_s11  }
  0x1f   : > { %304 = sbr.rel (%p1586_p10) target bundleno = 876 (0x36c), region = 52 }
  0x24   : > { %1449 = dma.done.wait (%p1256_p9), [#allocation3], 2048  }
  0x25   : > { %1451 = vsyncadd (%p1256_p9), [#allocation3], 4294965248 }
  0x26   : > { %1453 = dma.done.wait (%p1256_p9), [#allocation6], 2176  }
  0x27   : > { %1455 = vsyncadd (%p1256_p9), [#allocation6], 4294965120  ;;  %p349_p13 = scmp.lt.s32.totalorder %s1558_s9, 1  ;;  %v1202_v0 = vld [vmem:[#allocation2 + $0x38] sm:$0xff]  ;;  %v1201_v2 = vld [vmem:[#allocation2 + $0x30] sm:$0xff]  ;;  %vm524_vm0 = vcmask 1041408  }
  0x28   : > { %v1210_v1 = vld [vmem:[#allocation2 + $0x78] sm:$0xff]  ;;  %491 = vmatpush.bf16.msra.mxu0 %v1202_v0  ;;  %v1209_v3 = vld [vmem:[#allocation2 + $0x70] sm:$0xff]  ;;  %v1200_v5 = vld [vmem:[#allocation2 + $0x28] sm:$0xff]  ;;  %vm520_vm1 = vcmask 31744   ;;  %s1485_s22 = smov 114   ;;  %s1486_s23 = smov 127  }
  0x29   : > { %s350_s2 = scalar_select %p349_p13, %s1558_s9, 1  ;;  %504 = vmatpush.bf16.msra.mxu1 %v1210_v1  ;;  %v1208_v6 = vld [vmem:[#allocation2 + $0x68] sm:$0xff]  ;;  %v1199_v7 = vld [vmem:[#allocation2 + $0x20] sm:$0xff]  ;;  %v1198_v11 = vld [vmem:[#allocation2 + $0x18] sm:$0xff]  ;;  %v1488_v29 = vmov 0   ;;  %vm737_vm2 = vcmask 7168  }
  0x2a   : > { %v1207_v8 = vld [vmem:[#allocation2 + $0x60] sm:$0xff]  ;;  %v1206_v12 = vld [vmem:[#allocation2 + $0x58] sm:$0xff]  ;;  %v1197_v13 = vld [vmem:[#allocation2 + $0x10] sm:$0xff]  ;;  %s1487_s26 = smov 123   ;;  %1311 = vset.pattern.permute.xlu1 %v1488_v29  ;;  %1312 = vset.pattern.permute.xlu2 %v1488_v29  ;;  %s1489_s20 = smov 14   ;;  %vm739_vm3 = vcmask 39936  }
  0x2b   : > { %s1194_s1 = sshll.u32 %s350_s2, 2  ;;  %v1205_v14 = vld [vmem:[#allocation2 + $0x50] sm:$0xff]  ;;  %v1196_v15 = vld [vmem:[#allocation2 + $0x8] sm:$0xff]  ;;  %v1195_v17 = vld [vmem:[#allocation2] sm:$0xff]  ;;  %1313 = vset.pattern.permute.xlu0 %v1488_v29  ;;  %vm741_vm4 = vcmask 113664   ;;  %vm743_vm5 = vcmask 408576  }
  0x2c   : > { %s353_s14 = scalar_lea.vmem %s1713_s0, %s1194_s1  ;;  %492 = vmatpush.bf16.msra.mxu0 %v1201_v2  ;;  %v1204_v16 = vld [vmem:[#allocation2 + $0x48] sm:$0xff]  ;;  %v1203_v18 = vld [vmem:[#allocation2 + $0x40] sm:$0xff]  ;;  %v518_v26 = vld [vmem:[%s1716_s3] sm:$0x3]  ;;  %s346_s18 = sand.u32 1, %s1466_s28   ;;  %vm915_vm7 = vcmask 1043456  }
  0x2d   : > { %v355_v4 = vld [vmem:[%s353_s14] sm:$0xf]  ;;  %505 = vmatpush.bf16.msra.mxu1 %v1209_v3  ;;  %v1106_v30 = vld [vmem:[%s1717_s4 + $0x4] sm:$0xf]  ;;  %v1110_v31 = vld [vmem:[%s1717_s4 + $0x8] sm:$0xf] }
  0x2e   : > { %390 = vst [vmem:[#allocation1] ss:$4 sm:$0xff] %v355_v4  ;;  %625 = vperm.xlu2 %1312, %v1110_v31   ;;  %v1114_v32 = vld [vmem:[%s1717_s4 + $0xc] sm:$0xf]  ;;  %v1105_v37 = vld [vmem:[%s1716_s3 + $0x2] sm:$0x3]  ;;  %vm1181_vm6 = vmpackc.low %vm743_vm5, %vm743_vm5 }
  0x2f   : > { %v1113_v38 = vld [vmem:[%s1716_s3 + $0x6] sm:$0x3]  ;;  %v519_v41 = vld [vmem:[%s1717_s4] sm:$0xf]  ;;  %v1109_v42 = vld [vmem:[%s1716_s3 + $0x4] sm:$0x3] }
  0x30   : > { %493 = vmatpush.bf16.msra.mxu0 %v1200_v5  ;;  %v542_v49 = vld [vmem:[#allocation7] sm:$0x3]  ;;  %v704_v61 = vld [vmem:[#allocation7 + $0x6] sm:$0x3]  ;;  %v598_v2 = vld [vmem:[#allocation7 + $0x2] sm:$0x3] }
  0x31   : > { %506 = vmatpush.bf16.msra.mxu1 %v1208_v6  ;;  %s1036_s19 = sshll.u32 %s346_s18, 3  ;;  %s1227_s21 = sshll.u32 %s1558_s9, 3 }
  0x32   : > { %s931_s2 = scalar_lea.hbm %s1721_s8, %s1227_s21  ;;  %s348_s1 = scalar_lea.vmem [#allocation8], %s1036_s19 }
  0x33   : > { %s933_s29 = sshll.u32 %s348_s1, 4  ;;  %s935_s11 = sshll.u32 %s931_s2, 4  ;;  %s934_s29 = int_to_ptr.vmem [resolvable:$true] %s933_s29  ;;  %s936_s11 = int_to_ptr.hbm [resolvable:$true] %s935_s11 }
  0x34   : > { %494 = vmatpush.bf16.msra.mxu0 %v1199_v7  ;;  %s920_s9 = scalar_lea.sflag [#allocation4], %s346_s18  ;;  %s1418_s14 = sshra.s32 %s936_s11, 4  ;;  %s1419_s14 = int_to_ptr.hbm [resolvable:$true] %s1418_s14 }
  0x35   : > { %v391_v9 = vld.sshfl [vmem:[#allocation1] sm:$0xff pattern:$0x73625140]  ;;  %v392_v10 = vld.sshfl [vmem:[#allocation1 + $0x8] sm:$0xff pattern:$0x73625140]  ;;  %507 = vmatpush.bf16.msra.mxu1 %v1207_v8  ;;  %p1425_p3 = scmp.lt.s32.totalorder %s1419_s14, %s1721_s8 }
  0x36   : > { %868 = vst [vmem:[#allocation1] ss:$4 sm:$0xff] %v355_v4  ;;  %678 = vperm.xlu2 %1312, %v1114_v32   ;;  %s1420_s17 = scalar_lea.hbm %s1419_s14, 8 }
  0x37   : > { %p1421_p0 = scmp.ne.s32.totalorder %s1419_s14, %s1420_s17 }
  0x38   : > { %495 = vmatpush.bf16.msra.mxu0 %v1198_v11 }
  0x39   : > { %508 = vmatpush.bf16.msra.mxu1 %v1206_v12  ;;  %p1422_p1 = pnand %p1421_p0, %p1575_p5 }
  0x3b   : > { %p1423_p2 = pneg %p1422_p1 }
  0x3c   : > { %496 = vmatpush.bf16.msra.mxu0 %v1197_v13  ;;  %v1175_v13 = vld [vmem:[#allocation5 + $0x70] sm:$0xf] }
  0x3d   : > { %509 = vmatpush.bf16.msra.mxu1 %v1205_v14  ;;  %v1226_v14 = vld [vmem:[#allocation5 + $0x74] sm:$0xf0] }
  0x40   : > { %497 = vmatpush.bf16.msra.mxu0 %v1196_v15  ;;  %v1225_v15 = vld [vmem:[#allocation5 + $0x74] sm:$0xf] }
  0x41   : > { %510 = vmatpush.bf16.msra.mxu1 %v1204_v16  ;;  %v1176_v16 = vor.u32 %v1226_v14, %v1175_v13 }
  0x44   : > { %498 = vmatpush.bf16.msra.mxu0 %v1195_v17  ;;  %v1177_v17 = vld [vmem:[#allocation5 + $0x78] sm:$0xf0] }
  0x45   : > { %511 = vmatpush.bf16.msra.mxu1 %v1203_v18  ;;  %v1167_v18 = vld [vmem:[#allocation5 + $0x60] sm:$0xf] }
  0x47   : > { %499 = vmatmul.bf16.vlgmr.msra.gmra.mxu0 %v391_v9  ;;  %v651_v9 = vld [vmem:[#allocation7 + $0x4] sm:$0x3] }
  0x48   : > { %512 = vmatmul.bf16.vlgmr.msra.gmra.mxu1 %v392_v10 }
  0x88   : > { %v626_v50 = vpop.permute.xlu2 %625 }
  0x90   : > { %v679_v51 = vpop.permute.xlu2 %678 }
  0xc4   : > { %v500_v19 = vpop.f32.mrf.mxu0 }
  0xc5   : > { %v513_v20 = vpop.f32.mrf.mxu1 }
  0xc6   : > { %v514_v21 = vadd.f32 %v513_v20, %v500_v19  ;;  %v1224_v19 = vld [vmem:[#allocation5 + $0x64] sm:$0xf0]  ;;  %v1180_v20 = vor.u32 %v1225_v15, %v1177_v17 }
  0xc8   : > { %v517_v22 = vpack.c.bf16 %v514_v21, %v514_v21  ;;  %v1223_v21 = vld [vmem:[#allocation5 + $0x64] sm:$0xf] }
  0xca   : > { %v573_v23 = vunpack.c.l.b16 %v517_v22  ;;  %v526_v24 = vsel %vm524_vm0, %v517_v22, 0  ;;  %v1169_v22 = vld [vmem:[#allocation5 + $0x68] sm:$0xf0] }
  0xcb   : > { %535 = vmatpush.bf16.msra.mxu2 %v526_v24  ;;  %v1172_v24 = vor.u32 %v1223_v21, %v1169_v22 }
  0xcc   : > { %v574_v25 = vpack.c.b16 %v573_v23, %v573_v23  ;;  %v502_v27 = vpop.f32.mrf.mxu0  ;;  %v1168_v23 = vor.u32 %v1224_v19, %v1167_v18 }
  0xcd   : > { %v515_v28 = vpop.f32.mrf.mxu1  ;;  %v1221_v27 = vld [vmem:[#allocation5 + $0x54] sm:$0xf] }
  0xce   : > { %681 = vrot.lane.b32.xlu1 %v574_v25, %s1485_s22  ;;  %575 = vrot.lane.b32.xlu0 %v574_v25, %s1486_s23  ;;  %v1161_v28 = vld [vmem:[#allocation5 + $0x58] sm:$0xf0]  ;;  %s1490_s22 = smov 1   ;;  %s1491_s23 = smov 5  }
  0xcf   : > { %1103 = vmatmul.msk.bf16.vlgmr.msra.gmra.mxu2 %vm520_vm1, %v518_v26  ;;  %v1222_v26 = vld [vmem:[#allocation5 + $0x54] sm:$0xf0]  ;;  %v1164_v32 = vor.u32 %v1221_v27, %v1161_v28 }
  0xd6   : > { %628 = vrot.lane.b32.xlu0 %v574_v25, %s1487_s26  ;;  %569 = vperm.xlu1 %1311, %v1106_v30   ;;  %v1159_v25 = vld [vmem:[#allocation5 + $0x50] sm:$0xf] }
  0xd7   : > { %v1160_v29 = vor.u32 %v1222_v26, %v1159_v25 }
 0x140   : > { %v682_v33 = vpop.permute.xlu1 %681  ;;  %v576_v34 = vpop.permute.xlu0 %575 }
 0x141   : > { %v581_v35 = vsel %vm524_vm0, %v576_v34, 0  ;;  %v687_v36 = vsel %vm524_vm0, %v682_v33, 0 }
 0x142   : > { %590 = vmatpush.bf16.msrb.mxu2 %v581_v35  ;;  %696 = vmatpush.bf16.msrb.mxu0 %v687_v36  ;;  %v1151_v36 = vld [vmem:[#allocation5 + $0x40] sm:$0xf] }
 0x145   : > { %1107 = vmatmul.msk.bf16.vlgmr.msrb.gmra.mxu2 %vm520_vm1, %v1105_v37  ;;  %1115 = vmatmul.msk.bf16.vlgmr.msrb.gmra.mxu0 %vm520_vm1, %v1113_v38  ;;  %v1220_v37 = vld [vmem:[#allocation5 + $0x44] sm:$0xf0]  ;;  %v1219_v38 = vld [vmem:[#allocation5 + $0x44] sm:$0xf] }
 0x148   : > { %v629_v39 = vpop.permute.xlu0 %628  ;;  %v570_v55 = vpop.permute.xlu1 %569 }
 0x149   : > { %v634_v40 = vsel %vm524_vm0, %v629_v39, 0  ;;  %v1152_v39 = vor.u32 %v1220_v37, %v1151_v36 }
 0x14a   : > { %643 = vmatpush.bf16.msra.mxu2 %v634_v40  ;;  %v1153_v40 = vld [vmem:[#allocation5 + $0x48] sm:$0xf0] }
 0x14e   : > { %842 = vmatpush.bf16.msrb.mxu2 %v1176_v16 }
 0x152   : > { %v537_v43 = vpop.f32.mrf.mxu2  ;;  %843 = vmatpush.bf16.msrb.mxu2 %v1168_v23 }
 0x153   : > { %v538_v44 = vadd.f32 %v537_v43, %v519_v41  ;;  %v1156_v41 = vor.u32 %v1219_v38, %v1153_v40  ;;  %v1218_v43 = vld [vmem:[#allocation5 + $0x34] sm:$0xf0] }
 0x155   : > { %1111 = vmatmul.msk.bf16.vlgmr.msra.gmra.mxu2 %vm520_vm1, %v1109_v42  ;;  %v541_v45 = vmax.f32 %v538_v44, 0.0  ;;  %v1143_v42 = vld [vmem:[#allocation5 + $0x30] sm:$0xf]  ;;  %v1217_v44 = vld [vmem:[#allocation5 + $0x34] sm:$0xf] }
 0x156   : > { %844 = vmatpush.bf16.msrb.mxu2 %v1160_v29 }
 0x157   : > { %v543_v46 = vpack.c.bf16 %v541_v45, %v541_v45  ;;  %v1144_v45 = vor.u32 %v1218_v43, %v1143_v42 }
 0x159   : > { %v548_v47 = vsel %vm524_vm0, %v543_v46, 0  ;;  %v1145_v46 = vld [vmem:[#allocation5 + $0x38] sm:$0xf0] }
 0x15a   : > { %v539_v48 = vpop.f32.mrf.mxu2  ;;  %557 = vmatpush.bf16.msra.mxu3 %v548_v47  ;;  %845 = vmatpush.bf16.msrb.mxu2 %v1152_v39  ;;  %v1148_v47 = vor.u32 %v1217_v44, %v1145_v46 }
 0x15b   : > { %v1135_v48 = vld [vmem:[#allocation5 + $0x20] sm:$0xf] }
 0x15d   : > { %1104 = vmatmul.msk.bf16.vlgmr.msra.gmra.mxu3 %vm520_vm1, %v542_v49  ;;  %v1216_v49 = vld [vmem:[#allocation5 + $0x24] sm:$0xf0] }
 0x15e   : > { %846 = vmatpush.bf16.msrb.mxu2 %v1144_v45 }
 0x1c2   : > { %v698_v52 = vpop.f32.mrf.mxu0 }
 0x1c3   : > { %v699_v53 = vadd.f32 %v698_v52, %v679_v51  ;;  %v1137_v51 = vld [vmem:[#allocation5 + $0x28] sm:$0xf0]  ;;  %v1136_v52 = vor.u32 %v1216_v49, %v1135_v48 }
 0x1c5   : > { %v702_v54 = vmax.f32 %v699_v53, 0.0  ;;  %847 = vmatpush.bf16.msrb.mxu2 %v1136_v52 }
 0x1c7   : > { %v705_v56 = vpack.c.bf16 %v702_v54, %v702_v54  ;;  %v1127_v54 = vld [vmem:[#allocation5 + $0x10] sm:$0xf] }
 0x1c8   : > { %v592_v57 = vpop.f32.mrf.mxu2 }
 0x1c9   : > { %v593_v58 = vadd.f32 %v592_v57, %v570_v55  ;;  %v710_v59 = vsel %vm524_vm0, %v705_v56, 0  ;;  %v1214_v55 = vld [vmem:[#allocation5 + $0x14] sm:$0xf0]  ;;  %v1213_v56 = vld [vmem:[#allocation5 + $0x14] sm:$0xf] }
 0x1ca   : > { %719 = vmatpush.bf16.msrb.mxu1 %v710_v59  ;;  %v700_v60 = vpop.f32.mrf.mxu0  ;;  %v1129_v57 = vld [vmem:[#allocation5 + $0x18] sm:$0xf0] }
 0x1cb   : > { %v596_v62 = vmax.f32 %v593_v58, 0.0  ;;  %v1128_v58 = vor.u32 %v1214_v55, %v1127_v54  ;;  %v1132_v59 = vor.u32 %v1213_v56, %v1129_v57  ;;  %v870_v60 = vld.sshfl [vmem:[#allocation1 + $0x8] sm:$0xff pattern:$0x73625140] }
 0x1cd   : > { %v599_v63 = vpack.c.bf16 %v596_v62, %v596_v62  ;;  %1116 = vmatmul.msk.bf16.vlgmr.msrb.gmra.mxu1 %vm520_vm1, %v704_v61  ;;  %848 = vmatpush.bf16.msrb.mxu2 %v1128_v58  ;;  %v1119_v61 = vld [vmem:[#allocation5] sm:$0xf]  ;;  %v1212_v62 = vld [vmem:[#allocation5 + $0x4] sm:$0xf0] }
 0x1cf   : > { %v604_v0 = vsel %vm524_vm0, %v599_v63, 0  ;;  %v1211_v63 = vld [vmem:[#allocation5 + $0x4] sm:$0xf] }
 0x1d0   : > { %v594_v1 = vpop.f32.mrf.mxu2  ;;  %613 = vmatpush.bf16.msrb.mxu3 %v604_v0  ;;  %v1120_v0 = vor.u32 %v1212_v62, %v1119_v61 }
 0x1d1   : > { %v1121_v1 = vld [vmem:[#allocation5 + $0x8] sm:$0xf0] }
 0x1d2   : > { %849 = vmatpush.bf16.msrb.mxu2 %v1120_v0 }
 0x1d3   : > { %1108 = vmatmul.msk.bf16.vlgmr.msrb.gmra.mxu3 %vm520_vm1, %v598_v2  ;;  %v869_v2 = vld.sshfl [vmem:[#allocation1] sm:$0xff pattern:$0x73625140] }
 0x1d8   : > { %v645_v3 = vpop.f32.mrf.mxu2 }
 0x1d9   : > { %v646_v4 = vadd.f32 %v645_v3, %v626_v50  ;;  %v1215_v50 = vld [vmem:[#allocation5 + $0x24] sm:$0xf]  ;;  %v876_v3 = vsel %vm524_vm0, %v870_v60, 0 }
 0x1da   : > { %v1140_v53 = vor.u32 %v1215_v50, %v1137_v51  ;;  %898 = vmatpush.bf16.msra.mxu1 %v876_v3 }
 0x1db   : > { %v649_v5 = vmax.f32 %v646_v4, 0.0  ;;  %v1124_v4 = vor.u32 %v1211_v63, %v1121_v1 }
 0x1dd   : > { %v652_v6 = vpack.c.bf16 %v649_v5, %v649_v5  ;;  %v874_v5 = vsel %vm524_vm0, %v869_v2, 0 }
 0x1de   : > { %885 = vmatpush.bf16.msra.mxu0 %v874_v5 }
 0x1df   : > { %v657_v7 = vsel %vm524_vm0, %v652_v6, 0  ;;  %v356_v6 = vld [vmem:[%s1718_s5] sm:$0x3] }
 0x1e0   : > { %v647_v8 = vpop.f32.mrf.mxu2  ;;  %666 = vmatpush.bf16.msra.mxu3 %v657_v7  ;;  %v1667_v10 = vpop.f32.mrf.mxu3  ;;  %1188 = vmatmul.msk.bf16.vlgmr.msra.gmra.mxu1 %vm520_vm1, %v356_v6  ;;  %v904_v7 = vld [vmem:[%s1720_s7] sm:$0xf] }
 0x1e1   : > { %1187 = vmatmul.msk.bf16.vlgmr.msra.gmra.mxu0 %vm520_vm1, %v356_v6 }
 0x1e3   : > { %1112 = vmatmul.msk.bf16.vlgmr.msra.gmra.mxu3 %vm520_vm1, %v651_v9 }
 0x1e4   : > { %855 = vmatpush.bf16.msrb.mxu3 %v1180_v20 }
 0x1e8   : > { %v561_v11 = vpop.f32.mrf.mxu3  ;;  %856 = vmatpush.bf16.msrb.mxu3 %v1172_v24 }
 0x1ec   : > { %857 = vmatpush.bf16.msrb.mxu3 %v1164_v32 }
 0x1f0   : > { %858 = vmatpush.bf16.msrb.mxu3 %v1156_v41 }
 0x1f4   : > { %859 = vmatpush.bf16.msrb.mxu3 %v1148_v47 }
 0x1f8   : > { %860 = vmatpush.bf16.msrb.mxu3 %v1140_v53 }
 0x1fc   : > { %861 = vmatpush.bf16.msrb.mxu3 %v1132_v59 }
 0x200   : > { %862 = vmatpush.bf16.msrb.mxu3 %v1124_v4 }
 0x24a   : > { %v721_v12 = vpop.f32.mrf.mxu1 }
 0x24b   : > { %734 = vrot.lane.b32.xlu2 %v721_v12, %s1489_s20 }
 0x252   : > { %v723_v31 = vpop.f32.mrf.mxu1 }
 0x256   : > { %v615_v30 = vpop.f32.mrf.mxu3 }
 0x257   : > { %726 = vrot.lane.b32.xlu0 %v615_v30, %s1490_s22 }
 0x25d   : > { %v900_v16 = vpop.f32.mrf.mxu1 }
 0x25e   : > { %v617_v33 = vpop.f32.mrf.mxu3  ;;  %v887_v17 = vpop.f32.mrf.mxu0 }
 0x25f   : > { %907 = vperm.xlu0 %1313, %v904_v7  }
 0x265   : > { %v902_v18 = vpop.f32.mrf.mxu1 }
 0x266   : > { %v668_v34 = vpop.f32.mrf.mxu3  ;;  %v889_v19 = vpop.f32.mrf.mxu0 }
 0x267   : > { %730 = vrot.lane.b32.xlu1 %v668_v34, %s1491_s23  ;;  %s1424_s23 = scalar_lea.hbm %s1721_s8, 16 }
 0x268   : > { %p1426_p4 = scmp.lt.s32.totalorder %s1424_s23, %s1420_s17 }
 0x26a   : > { %p1427_p7 = por %p1426_p4, %p1425_p3 }
 0x26c   : > { %p1428_p8 = pnand %p1427_p7, %p1423_p2 }
 0x26e   : > { %v670_v35 = vpop.f32.mrf.mxu3 }
 0x2a5   : > { %v735_v9 = vpop.permute.xlu2 %734 }
 0x2c9   : > { %v727_v8 = vpop.permute.xlu0 %726 }
 0x2ca   : > { %v738_v11 = vsel %vm737_vm2, %v1667_v10, %v727_v8 }
 0x2d1   : > { %v908_v20 = vpop.permute.xlu0 %907 }
 0x2d9   : > { %v731_v12 = vpop.permute.xlu1 %730 }
 0x2da   : > { %v740_v13 = vsel %vm739_vm3, %v738_v11, %v731_v12 }
 0x2db   : > { %v742_v14 = vsel %vm741_vm4, %v740_v13, %v735_v9 }
 0x2dc   : > { %v1182_v15 = vpack.c.bf16 %v742_v14, %v742_v14 }
 0x2de   : > { %1183 = vmatmul.msk.bf16.vlgmr.msrb.gmra.mxu2 %vm1181_vm6, %v1182_v15  ;;  %1186 = vmatmul.msk.bf16.vlgmr.msrb.gmra.mxu3 %vm1181_vm6, %v1182_v15 }
 0x361   : > { %v851_v21 = vpop.f32.mrf.mxu2  ;;  %v864_v22 = vpop.f32.mrf.mxu3 }
 0x362   : > { %v888_v10 = vadd.f32 %v887_v17, %v851_v21  ;;  %v901_v23 = vadd.f32 %v900_v16, %v864_v22 }
 0x364   : > { %v911_v24 = vadd.f32 %v908_v20, %v901_v23  ;;  %v910_v25 = vadd.f32 %v908_v20, %v888_v10 }
 0x366   : > { %v914_v26 = vrot.slane %v911_v24, 4 }
 0x368   : > { %v916_v27 = vsel %vm915_vm7, %v910_v25, %v914_v26 }
 0x369   : > { %v853_v28 = vpop.f32.mrf.mxu2  ;;  %v866_v29 = vpop.f32.mrf.mxu3  ;;  %918 = vst [vmem:[%s348_s1] sm:$0xff] %v916_v27 }
 0x36a   : > { %1431 = shalt.err (!%p1428_p8)
}
 0x36b   : > { %1240 = dma.vmem_to_hbm [thread:$0]  (%p1575_p5), %s934_s29, 128, %s936_s11, %s920_s9  }
 0x36c PF: > { %p1262_p9 = scmp.ge.s32.totalorder %s1474_s30, 2  ;;  %s947_s12 = sand.u32 1, %s1462_s27  }
 0x36d   : > { %s948_s13 = scalar_lea.sflag [#allocation4], %s947_s12 }
 0x36e   : > { %p1253_p10 = pnand %p1262_p9, %p1579_p6 }
 0x370   : > { %p1254_p11 = pneg %p1253_p10 }
 0x372   : > { %1457 = dma.done.wait (%p1254_p11), %s948_s13, 128  }
 0x373   : > { %1459 = vsyncadd (%p1254_p11), %s948_s13, 4294967168  ;;  %s1736_s30 = sld [smem:[#allocation13_spill]]  ;;  %s1739_s27 = smov %s1466_s28 }
 0x374   : > { %s1737_s18 = sld [smem:[#allocation12_spill]] }
 0x375   : > { %s1738_s29 = sld [smem:[#allocation14_spill]] }
 0x379   : > { %p20_p12 = scmp.ge.s32.totalorder %s1736_s30, 4  }
 0x37a   : > { %s1740_s28 = smov %s1737_s18 }
 0x37b   :  { %22 = sbr.rel (!%p20_p12) target bundleno = 8 (0x8), region = 109 }
 0x380   :  { %954 = vsyncpa [#allocation3], 1 }
 0x381   :  { %956 = vsyncpa [#allocation3 + $0x1], 1 }
 0x382   :  { %957 = vsyncpa [#allocation6], 1 }
 0x383   :  { %958 = vsyncpa [#allocation4], 1 }
 0x384   :  { %960 = vsyncpa [#allocation4 + $0x1], 1 }

</bundles_post_ra>
